<compile_context>
chip_gen: v7x
topology: tpu7x:2x2x1
jax: 0.10.0
libtpu: 0.0.40
codegen_flags: <defaults>
</compile_context>

<pallas_src>
import functools
import math

import jax
import jax.numpy as jnp
from jax import lax
from jax.experimental import pallas as pl
from jax.experimental.pallas import tpu as pltpu

KH = KW = 3
STRIDE = 2
PAD = 1
_LANE = 128
_MAX_M_TILE = 4096            # cap on output positions (th * Wk) per grid step


def _round_up(x, m):
    return ((x + m - 1) // m) * m


def _sublane(itemsize):
    return 8 * (4 // itemsize)          # sublane tile: 8 for f32, 16 for bf16


def _vmem_limit_bytes():
    """Per-generation VMEM limit: ~3/4 of physical (96 MiB v5e/v6e, 48 MiB v7x)."""
    phys = 64 * 1024 * 1024
    try:
        phys = int(pltpu.get_tpu_info().vmem_capacity_bytes)
    except Exception:
        pass
    return max(32 * 1024 * 1024, min((phys * 3) // 4, 112 * 1024 * 1024))


def _tile_vmem_bytes(th, ho, wk, cin, cpad, itemsize):
    """Conservative VMEM estimate (padded to (8/16, 128) tiles) for row-block th."""
    sub = _sublane(itemsize)
    hh = _round_up(ho, th) + 1
    cin_lane = _round_up(cin, _LANE)
    cin_sub = _round_up(cin, sub)
    planes = 2 * 6 * _round_up(hh * wk, sub) * cin_lane * itemsize   # resident input planes
    wgt = 2 * KH * KW * cin_sub * cpad * itemsize                    # resident weights
    bias = 2 * 8 * cpad * 4
    out = 2 * th * wk * cpad * 4                                     # double-buffered out tile
    acc = th * wk * cpad * 4                                         # f32 accumulator
    lhs = 2 * th * wk * cin_lane * itemsize                          # per-tap LHS transients
    return planes + wgt + bias + out + acc + lhs


def _pick_row_block(batch, ho, wk, cin, cpad, itemsize, budget):
    th = max(1, min(ho, _MAX_M_TILE // max(wk, 1)))
    if batch == 1 and ho >= 2:
        th = min(th, (ho + 1) // 2)     # keep >= 2 grid steps for the two v7x cores
    while th > 1 and _tile_vmem_bytes(th, ho, wk, cin, cpad, itemsize) > budget:
        th -= 1
    return th


def _downsample_kernel(xpl_ref, w_ref, b_ref, o_ref, *, th, wk, cpad):
    # xpl_ref: (1, 6, Hh*Wk, Cin)    stride-2 input planes, VMEM-resident per batch elem
    # w_ref:   (9, Cin, Cpad)        per-tap weights, resident
    # b_ref:   (1, Cpad)   f32       bias, resident
    # o_ref:   (1, th*Wk, Cpad) f32  output row-block (lane-dense)
    m0 = pl.program_id(1) * (th * wk)
    acc = jnp.zeros((th * wk, cpad), jnp.float32)
    for kh in range(KH):
        for kw in range(KW):
            plane = (kh % 2) * KW + kw                 # (row parity, col tap) -> plane id
            start = pl.multiple_of(m0 + (kh // 2) * wk, wk)
            lhs = xpl_ref[0, plane, pl.ds(start, th * wk), :]
            acc += jnp.dot(lhs, w_ref[kh * KW + kw],
                           preferred_element_type=jnp.float32)
    o_ref[0, :, :] = acc + b_ref[...]


def downsample(x, weight, bias, *, compute_dtype=jnp.bfloat16):
    """Forward pass of DownSample.

    x:      (B, C, H, W)  float32, NCHW
    weight: (C, C, 3, 3)  float32, OIHW (PyTorch Conv2d layout)
    bias:   (C,)          float32
    returns (B, C, Ho, Wo) float32, Ho = (H + 2 - 3)//2 + 1
    """
    B, Cin, H, W = x.shape
    Cout = weight.shape[0]
    Ho = (H + 2 * PAD - KH) // STRIDE + 1
    Wo = (W + 2 * PAD - KW) // STRIDE + 1
    itemsize = jnp.dtype(compute_dtype).itemsize
    sub = _sublane(itemsize)

    Cpad = _round_up(Cout, _LANE)        # lane-dense output / weight columns
    Wk = _round_up(Wo, sub)              # working output width (tile-aligned slices)

    limit = _vmem_limit_bytes()
    th = _pick_row_block(B, Ho, Wk, Cin, Cpad, itemsize, limit - 4 * 1024 * 1024)
    Ho_pad = _round_up(Ho, th)
    Hh = Ho_pad + 1                      # one halo row for the kh=2 taps

    # ---- glue: one fused pad + stride-2 plane split (no im2col in HBM). ------------
    # plane[b, r*3 + v, y*Wk + xx, c] = x_padded[b, 2*y + r, 2*xx + v, c]
    x_nhwc = jnp.transpose(x, (0, 2, 3, 1)).astype(compute_dtype)
    x_pad = jnp.pad(
        x_nhwc,
        ((0, 0), (PAD, 2 * Hh - H - PAD), (PAD, 2 * Wk + 2 - W - PAD), (0, 0)))
    planes = [x_pad[:, r:r + 2 * Hh:2, v:v + 2 * Wk:2, :]
              for r in range(2) for v in range(KW)]
    xpl = jnp.stack(planes, axis=1).reshape(B, 2 * KW, Hh * Wk, Cin)

    # Weights OIHW -> (9, Cin, Cout) tap-major; Cout zero-padded to a lane multiple.
    w9 = jnp.transpose(weight, (2, 3, 1, 0)).reshape(KH * KW, Cin, Cout)
    w9 = jnp.pad(w9, ((0, 0), (0, 0), (0, Cpad - Cout))).astype(compute_dtype)
    b2 = jnp.pad(bias, (0, Cpad - Cout)).reshape(1, Cpad).astype(jnp.float32)

    kernel = functools.partial(_downsample_kernel, th=th, wk=Wk, cpad=Cpad)
    cost = pl.CostEstimate(
        flops=2 * B * Ho_pad * Wk * KH * KW * Cin * Cpad,
        transcendentals=0,
        bytes_accessed=(xpl.size * itemsize + w9.size * itemsize + Cpad * 4
                        + B * Ho_pad * Wk * Cpad * 4),
    )

    out = pl.pallas_call(
        kernel,
        out_shape=jax.ShapeDtypeStruct((B, Ho_pad * Wk, Cpad), jnp.float32),
        grid_spec=pltpu.PrefetchScalarGridSpec(
            num_scalar_prefetch=0,
            grid=(B, Ho_pad // th),
            in_specs=[
                # input planes: resident per batch element (index ignores the row axis)
                pl.BlockSpec((1, 2 * KW, Hh * Wk, Cin), lambda b, i: (b, 0, 0, 0)),
                # TODO(synk): pipeline_mode=pl.Buffered(1) on the two resident operands
                # (and an N grid axis over Cout for C >~ 1024) to free VMEM on v7x.
                pl.BlockSpec((KH * KW, Cin, Cpad), lambda b, i: (0, 0, 0)),
                pl.BlockSpec((1, Cpad), lambda b, i: (0, 0)),
            ],
            out_specs=pl.BlockSpec((1, th * Wk, Cpad), lambda b, i: (b, i, 0)),
        ),
        compiler_params=pltpu.CompilerParams(
            dimension_semantics=("parallel", "parallel"),
            vmem_limit_bytes=limit,
        ),
        cost_estimate=cost,
    )(xpl, w9, b2)

    out = out.reshape(B, Ho_pad, Wk, Cpad)[:, :Ho, :Wo, :Cout]
    # TODO(synk): keep NHWC (and optionally bf16) end-to-end when the consumer allows,
    # dropping both layout transposes and halving output writeback bytes.
    # TODO(synk): for very large spatial extents (e.g. 256x256 at C>=128 on v7x) switch
    # the resident planes to a manually double-buffered row-block DMA (pl.ANY input).
    return jnp.transpose(out, (0, 3, 1, 2))


if __name__ == "__main__":
    key = jax.random.PRNGKey(0)
    kx, kw_, kb = jax.random.split(key, 3)

    B, C, H, W = 2, 4, 16, 16
    x = jax.random.normal(kx, (B, C, H, W), jnp.float32)

    # Deterministic parameter init (PyTorch-style uniform bounds from fan_in).
    fan_in = C * KH * KW
    bound = 1.0 / math.sqrt(fan_in)
    weight = jax.random.uniform(kw_, (C, C, KH, KW), jnp.float32, -bound, bound)
    bias = jax.random.uniform(kb, (C,), jnp.float32, -bound, bound)

    # Reference: XLA's conv in f32.
    ref = lax.conv_general_dilated(
        x, weight, window_strides=(STRIDE, STRIDE),
        padding=((PAD, PAD), (PAD, PAD)),
        dimension_numbers=("NCHW", "OIHW", "NCHW"),
    ) + bias[None, :, None, None]

    # bf16 fast path (default).
    out_bf16 = jax.block_until_ready(jax.jit(downsample)(x, weight, bias))
    assert out_bf16.shape == (B, C, H // 2, W // 2), out_bf16.shape
    assert jnp.allclose(out_bf16, ref, atol=1e-1, rtol=1e-1)

    # f32 path, strict tolerance.
    out_f32 = jax.block_until_ready(
        jax.jit(functools.partial(downsample, compute_dtype=jnp.float32))(x, weight, bias))
    assert jnp.allclose(out_f32, ref, atol=1e-5, rtol=1e-5)

    print("KERNEL_OK")
</pallas_src>

<mosaic_0001>
module attributes {stable_mosaic.version = 11 : i64} {
  func.func @_downsample_kernel(%arg0: i32, %arg1: i32, %arg2: memref<1x6x144x4xbf16, #tpu.memory_space<vmem>>, %arg3: memref<9x4x128xbf16, #tpu.memory_space<vmem>>, %arg4: memref<1x128xf32, #tpu.memory_space<vmem>>, %arg5: memref<1x128x128xf32, #tpu.memory_space<vmem>>) attributes {dimension_semantics = [#tpu.dimension_semantics<parallel>, #tpu.dimension_semantics<parallel>], iteration_bounds = array<i64: 2, 1>, scalar_prefetch = 0 : i64, scratch_operands = 0 : i64, tpu.core_type = #tpu.core_type<tc>, window_params = [{transform_indices = @transform_0, window_bounds = array<i64: 1, 6, 144, 4>}, {pipeline_mode = #tpu.pipeline_mode<synchronous>, transform_indices = @transform_1, window_bounds = array<i64: 9, 4, 128>}, {pipeline_mode = #tpu.pipeline_mode<synchronous>, transform_indices = @transform_2, window_bounds = array<i64: 1, 128>}, {transform_indices = @transform_3, window_bounds = array<i64: 1, 128, 128>}]} {
    %c128_i32 = arith.constant 128 : i32
    %0 = arith.muli %arg1, %c128_i32 : i32
    %cst = arith.constant 0.000000e+00 : f32
    %1 = vector.broadcast %cst : f32 to vector<128x128xf32>
    %c0_i32 = arith.constant 0 : i32
    %2 = arith.addi %0, %c0_i32 : i32
    %3 = tpu.assume_multiple %2, 16 : i32
    %c0 = arith.constant 0 : index
    %c0_0 = arith.constant 0 : index
    %4 = arith.index_cast %3 : i32 to index
    %c0_1 = arith.constant 0 : index
    %5 = vector.load %arg2[%c0, %c0_0, %4, %c0_1] : memref<1x6x144x4xbf16, #tpu.memory_space<vmem>>, vector<1x1x128x4xbf16>
    %6 = vector.shape_cast %5 : vector<1x1x128x4xbf16> to vector<128x4xbf16>
    %c0_2 = arith.constant 0 : index
    %c0_3 = arith.constant 0 : index
    %c0_4 = arith.constant 0 : index
    %7 = vector.load %arg3[%c0_2, %c0_3, %c0_4] : memref<9x4x128xbf16, #tpu.memory_space<vmem>>, vector<1x4x128xbf16>
    %8 = vector.shape_cast %7 : vector<1x4x128xbf16> to vector<4x128xbf16>
    %cst_5 = arith.constant dense<0.000000e+00> : vector<128x128xf32>
    %9 = tpu.matmul %6, %8, %cst_5 {dimension_numbers = #tpu.dot_dimension_numbers<[1], [0], [0], [1], [0, 0, 1, 1], [], []>} : vector<128x4xbf16>, vector<4x128xbf16>, vector<128x128xf32> -> vector<128x128xf32>
    %10 = arith.addf %1, %9 : vector<128x128xf32>
    %c0_i32_6 = arith.constant 0 : i32
    %11 = arith.addi %0, %c0_i32_6 : i32
    %12 = tpu.assume_multiple %11, 16 : i32
    %c0_7 = arith.constant 0 : index
    %c1 = arith.constant 1 : index
    %13 = arith.index_cast %12 : i32 to index
    %c0_8 = arith.constant 0 : index
    %14 = vector.load %arg2[%c0_7, %c1, %13, %c0_8] : memref<1x6x144x4xbf16, #tpu.memory_space<vmem>>, vector<1x1x128x4xbf16>
    %15 = vector.shape_cast %14 : vector<1x1x128x4xbf16> to vector<128x4xbf16>
    %c1_9 = arith.constant 1 : index
    %c0_10 = arith.constant 0 : index
    %c0_11 = arith.constant 0 : index
    %16 = vector.load %arg3[%c1_9, %c0_10, %c0_11] : memref<9x4x128xbf16, #tpu.memory_space<vmem>>, vector<1x4x128xbf16>
    %17 = vector.shape_cast %16 : vector<1x4x128xbf16> to vector<4x128xbf16>
    %cst_12 = arith.constant dense<0.000000e+00> : vector<128x128xf32>
    %18 = tpu.matmul %15, %17, %cst_12 {dimension_numbers = #tpu.dot_dimension_numbers<[1], [0], [0], [1], [0, 0, 1, 1], [], []>} : vector<128x4xbf16>, vector<4x128xbf16>, vector<128x128xf32> -> vector<128x128xf32>
    %19 = arith.addf %10, %18 : vector<128x128xf32>
    %c0_i32_13 = arith.constant 0 : i32
    %20 = arith.addi %0, %c0_i32_13 : i32
    %21 = tpu.assume_multiple %20, 16 : i32
    %c0_14 = arith.constant 0 : index
    %c2 = arith.constant 2 : index
    %22 = arith.index_cast %21 : i32 to index
    %c0_15 = arith.constant 0 : index
    %23 = vector.load %arg2[%c0_14, %c2, %22, %c0_15] : memref<1x6x144x4xbf16, #tpu.memory_space<vmem>>, vector<1x1x128x4xbf16>
    %24 = vector.shape_cast %23 : vector<1x1x128x4xbf16> to vector<128x4xbf16>
    %c2_16 = arith.constant 2 : index
    %c0_17 = arith.constant 0 : index
    %c0_18 = arith.constant 0 : index
    %25 = vector.load %arg3[%c2_16, %c0_17, %c0_18] : memref<9x4x128xbf16, #tpu.memory_space<vmem>>, vector<1x4x128xbf16>
    %26 = vector.shape_cast %25 : vector<1x4x128xbf16> to vector<4x128xbf16>
    %cst_19 = arith.constant dense<0.000000e+00> : vector<128x128xf32>
    %27 = tpu.matmul %24, %26, %cst_19 {dimension_numbers = #tpu.dot_dimension_numbers<[1], [0], [0], [1], [0, 0, 1, 1], [], []>} : vector<128x4xbf16>, vector<4x128xbf16>, vector<128x128xf32> -> vector<128x128xf32>
    %28 = arith.addf %19, %27 : vector<128x128xf32>
    %c0_i32_20 = arith.constant 0 : i32
    %29 = arith.addi %0, %c0_i32_20 : i32
    %30 = tpu.assume_multiple %29, 16 : i32
    %c0_21 = arith.constant 0 : index
    %c3 = arith.constant 3 : index
    %31 = arith.index_cast %30 : i32 to index
    %c0_22 = arith.constant 0 : index
    %32 = vector.load %arg2[%c0_21, %c3, %31, %c0_22] : memref<1x6x144x4xbf16, #tpu.memory_space<vmem>>, vector<1x1x128x4xbf16>
    %33 = vector.shape_cast %32 : vector<1x1x128x4xbf16> to vector<128x4xbf16>
    %c3_23 = arith.constant 3 : index
    %c0_24 = arith.constant 0 : index
    %c0_25 = arith.constant 0 : index
    %34 = vector.load %arg3[%c3_23, %c0_24, %c0_25] : memref<9x4x128xbf16, #tpu.memory_space<vmem>>, vector<1x4x128xbf16>
    %35 = vector.shape_cast %34 : vector<1x4x128xbf16> to vector<4x128xbf16>
    %cst_26 = arith.constant dense<0.000000e+00> : vector<128x128xf32>
    %36 = tpu.matmul %33, %35, %cst_26 {dimension_numbers = #tpu.dot_dimension_numbers<[1], [0], [0], [1], [0, 0, 1, 1], [], []>} : vector<128x4xbf16>, vector<4x128xbf16>, vector<128x128xf32> -> vector<128x128xf32>
    %37 = arith.addf %28, %36 : vector<128x128xf32>
    %c0_i32_27 = arith.constant 0 : i32
    %38 = arith.addi %0, %c0_i32_27 : i32
    %39 = tpu.assume_multiple %38, 16 : i32
    %c0_28 = arith.constant 0 : index
    %c4 = arith.constant 4 : index
    %40 = arith.index_cast %39 : i32 to index
    %c0_29 = arith.constant 0 : index
    %41 = vector.load %arg2[%c0_28, %c4, %40, %c0_29] : memref<1x6x144x4xbf16, #tpu.memory_space<vmem>>, vector<1x1x128x4xbf16>
    %42 = vector.shape_cast %41 : vector<1x1x128x4xbf16> to vector<128x4xbf16>
    %c4_30 = arith.constant 4 : index
    %c0_31 = arith.constant 0 : index
    %c0_32 = arith.constant 0 : index
    %43 = vector.load %arg3[%c4_30, %c0_31, %c0_32] : memref<9x4x128xbf16, #tpu.memory_space<vmem>>, vector<1x4x128xbf16>
    %44 = vector.shape_cast %43 : vector<1x4x128xbf16> to vector<4x128xbf16>
    %cst_33 = arith.constant dense<0.000000e+00> : vector<128x128xf32>
    %45 = tpu.matmul %42, %44, %cst_33 {dimension_numbers = #tpu.dot_dimension_numbers<[1], [0], [0], [1], [0, 0, 1, 1], [], []>} : vector<128x4xbf16>, vector<4x128xbf16>, vector<128x128xf32> -> vector<128x128xf32>
    %46 = arith.addf %37, %45 : vector<128x128xf32>
    %c0_i32_34 = arith.constant 0 : i32
    %47 = arith.addi %0, %c0_i32_34 : i32
    %48 = tpu.assume_multiple %47, 16 : i32
    %c0_35 = arith.constant 0 : index
    %c5 = arith.constant 5 : index
    %49 = arith.index_cast %48 : i32 to index
    %c0_36 = arith.constant 0 : index
    %50 = vector.load %arg2[%c0_35, %c5, %49, %c0_36] : memref<1x6x144x4xbf16, #tpu.memory_space<vmem>>, vector<1x1x128x4xbf16>
    %51 = vector.shape_cast %50 : vector<1x1x128x4xbf16> to vector<128x4xbf16>
    %c5_37 = arith.constant 5 : index
    %c0_38 = arith.constant 0 : index
    %c0_39 = arith.constant 0 : index
    %52 = vector.load %arg3[%c5_37, %c0_38, %c0_39] : memref<9x4x128xbf16, #tpu.memory_space<vmem>>, vector<1x4x128xbf16>
    %53 = vector.shape_cast %52 : vector<1x4x128xbf16> to vector<4x128xbf16>
    %cst_40 = arith.constant dense<0.000000e+00> : vector<128x128xf32>
    %54 = tpu.matmul %51, %53, %cst_40 {dimension_numbers = #tpu.dot_dimension_numbers<[1], [0], [0], [1], [0, 0, 1, 1], [], []>} : vector<128x4xbf16>, vector<4x128xbf16>, vector<128x128xf32> -> vector<128x128xf32>
    %55 = arith.addf %46, %54 : vector<128x128xf32>
    %c16_i32 = arith.constant 16 : i32
    %56 = arith.addi %0, %c16_i32 : i32
    %57 = tpu.assume_multiple %56, 16 : i32
    %c0_41 = arith.constant 0 : index
    %c0_42 = arith.constant 0 : index
    %58 = arith.index_cast %57 : i32 to index
    %c0_43 = arith.constant 0 : index
    %59 = vector.load %arg2[%c0_41, %c0_42, %58, %c0_43] : memref<1x6x144x4xbf16, #tpu.memory_space<vmem>>, vector<1x1x128x4xbf16>
    %60 = vector.shape_cast %59 : vector<1x1x128x4xbf16> to vector<128x4xbf16>
    %c6 = arith.constant 6 : index
    %c0_44 = arith.constant 0 : index
    %c0_45 = arith.constant 0 : index
    %61 = vector.load %arg3[%c6, %c0_44, %c0_45] : memref<9x4x128xbf16, #tpu.memory_space<vmem>>, vector<1x4x128xbf16>
    %62 = vector.shape_cast %61 : vector<1x4x128xbf16> to vector<4x128xbf16>
    %cst_46 = arith.constant dense<0.000000e+00> : vector<128x128xf32>
    %63 = tpu.matmul %60, %62, %cst_46 {dimension_numbers = #tpu.dot_dimension_numbers<[1], [0], [0], [1], [0, 0, 1, 1], [], []>} : vector<128x4xbf16>, vector<4x128xbf16>, vector<128x128xf32> -> vector<128x128xf32>
    %64 = arith.addf %55, %63 : vector<128x128xf32>
    %c16_i32_47 = arith.constant 16 : i32
    %65 = arith.addi %0, %c16_i32_47 : i32
    %66 = tpu.assume_multiple %65, 16 : i32
    %c0_48 = arith.constant 0 : index
    %c1_49 = arith.constant 1 : index
    %67 = arith.index_cast %66 : i32 to index
    %c0_50 = arith.constant 0 : index
    %68 = vector.load %arg2[%c0_48, %c1_49, %67, %c0_50] : memref<1x6x144x4xbf16, #tpu.memory_space<vmem>>, vector<1x1x128x4xbf16>
    %69 = vector.shape_cast %68 : vector<1x1x128x4xbf16> to vector<128x4xbf16>
    %c7 = arith.constant 7 : index
    %c0_51 = arith.constant 0 : index
    %c0_52 = arith.constant 0 : index
    %70 = vector.load %arg3[%c7, %c0_51, %c0_52] : memref<9x4x128xbf16, #tpu.memory_space<vmem>>, vector<1x4x128xbf16>
    %71 = vector.shape_cast %70 : vector<1x4x128xbf16> to vector<4x128xbf16>
    %cst_53 = arith.constant dense<0.000000e+00> : vector<128x128xf32>
    %72 = tpu.matmul %69, %71, %cst_53 {dimension_numbers = #tpu.dot_dimension_numbers<[1], [0], [0], [1], [0, 0, 1, 1], [], []>} : vector<128x4xbf16>, vector<4x128xbf16>, vector<128x128xf32> -> vector<128x128xf32>
    %73 = arith.addf %64, %72 : vector<128x128xf32>
    %c16_i32_54 = arith.constant 16 : i32
    %74 = arith.addi %0, %c16_i32_54 : i32
    %75 = tpu.assume_multiple %74, 16 : i32
    %c0_55 = arith.constant 0 : index
    %c2_56 = arith.constant 2 : index
    %76 = arith.index_cast %75 : i32 to index
    %c0_57 = arith.constant 0 : index
    %77 = vector.load %arg2[%c0_55, %c2_56, %76, %c0_57] : memref<1x6x144x4xbf16, #tpu.memory_space<vmem>>, vector<1x1x128x4xbf16>
    %78 = vector.shape_cast %77 : vector<1x1x128x4xbf16> to vector<128x4xbf16>
    %c8 = arith.constant 8 : index
    %c0_58 = arith.constant 0 : index
    %c0_59 = arith.constant 0 : index
    %79 = vector.load %arg3[%c8, %c0_58, %c0_59] : memref<9x4x128xbf16, #tpu.memory_space<vmem>>, vector<1x4x128xbf16>
    %80 = vector.shape_cast %79 : vector<1x4x128xbf16> to vector<4x128xbf16>
    %cst_60 = arith.constant dense<0.000000e+00> : vector<128x128xf32>
    %81 = tpu.matmul %78, %80, %cst_60 {dimension_numbers = #tpu.dot_dimension_numbers<[1], [0], [0], [1], [0, 0, 1, 1], [], []>} : vector<128x4xbf16>, vector<4x128xbf16>, vector<128x128xf32> -> vector<128x128xf32>
    %82 = arith.addf %73, %81 : vector<128x128xf32>
    %c0_61 = arith.constant 0 : index
    %c0_62 = arith.constant 0 : index
    %83 = vector.load %arg4[%c0_61, %c0_62] : memref<1x128xf32, #tpu.memory_space<vmem>>, vector<1x128xf32>
    %84 = vector.broadcast %83 : vector<1x128xf32> to vector<128x128xf32>
    %85 = arith.addf %82, %84 : vector<128x128xf32>
    %c0_63 = arith.constant 0 : index
    %c0_64 = arith.constant 0 : index
    %c0_65 = arith.constant 0 : index
    %86 = vector.load %arg5[%c0_63, %c0_64, %c0_65] : memref<1x128x128xf32, #tpu.memory_space<vmem>>, vector<1x128x128xf32>
    %87 = vector.shape_cast %86 : vector<1x128x128xf32> to vector<128x128xf32>
    %88 = vector.shape_cast %85 : vector<128x128xf32> to vector<1x128x128xf32>
    tpu.vector_store %arg5[%c0_63, %c0_64, %c0_65], %88 {strides = array<i32>} : memref<1x128x128xf32, #tpu.memory_space<vmem>>, vector<1x128x128xf32>,
    return
  }
  func.func @transform_0(%arg0: i32, %arg1: i32) -> (i32, i32, i32, i32) {
    %c0_i32 = arith.constant 0 : i32
    %c0_i32_0 = arith.constant 0 : i32
    %c0_i32_1 = arith.constant 0 : i32
    %c0_i32_2 = arith.constant 0 : i32
    return %arg0, %c0_i32, %c0_i32_0, %c0_i32_1 : i32, i32, i32, i32
  }
  func.func @transform_1(%arg0: i32, %arg1: i32) -> (i32, i32, i32) {
    %c0_i32 = arith.constant 0 : i32
    %c0_i32_0 = arith.constant 0 : i32
    %c0_i32_1 = arith.constant 0 : i32
    %c0_i32_2 = arith.constant 0 : i32
    return %c0_i32, %c0_i32_0, %c0_i32_1 : i32, i32, i32
  }
  func.func @transform_2(%arg0: i32, %arg1: i32) -> (i32, i32) {
    %c0_i32 = arith.constant 0 : i32
    %c0_i32_0 = arith.constant 0 : i32
    %c0_i32_1 = arith.constant 0 : i32
    return %c0_i32, %c0_i32_0 : i32, i32
  }
  func.func @transform_3(%arg0: i32, %arg1: i32) -> (i32, i32, i32) {
    %c0_i32 = arith.constant 0 : i32
    %c0_i32_0 = arith.constant 0 : i32
    return %arg0, %arg1, %c0_i32 : i32, i32, i32
  }
}

</mosaic_0001>

<bundles_post_ra>
// kernel: downsample.1
= control target key start
LH: loop header
LB: loop body
LE: loop exit
PB: predicated region body
PF: predicated region fallthrough
CT: control target
= control target key end

     0   :  { %s2940_s12 = smov 0   ;;  %s2942_s13 = smov 0   ;;  %s3217_s0 = inlined_call_operand.vmem [shape: bf16[2,6,144,4], index: 0, kind: input, shape index: {}]   ;;  %s3218_s1 = inlined_call_operand.vmem [shape: bf16[9,4,128], index: 1, kind: input, shape index: {}]   ;;  %s3219_s2 = inlined_call_operand.vmem [shape: f32[1,128], index: 2, kind: input, shape index: {}]   ;;  %s3220_s3 = inlined_call_operand.vmem [shape: f32[2,128,128], index: 3, kind: output, shape index: {}]  }
   0x1   :  { %s2944_s14 = smov 0  }
   0x2 LB: > { %s25_s15 = sadd.s32 1, %s2914_s13  ;;  %p2126_p0 = scmp.ge.s32.totalorder %s2918_s14, 1  ;;  %s2918_s14 = sphi %s2944_s14, %s13_s14   ;;  %s2914_s13 = sphi %s2942_s13, %s3222_s13   ;;  %s2910_s12 = sphi %s2940_s12, %s3221_s12  }
   0x3   : > { %p27_p1 = scmp.ge.s32.totalorder %s25_s15, 2  ;;  %p151_p2 = scmp.lt.s32.totalorder %s2918_s14, 3 }
   0x5   : > { %s3224_s15 = smov (%p27_p1, %s25_s15), 0  ;;  %p152_p3 = pnand %p2126_p0, %p151_p2 }
   0x6   : > { %v2146_v0 = vld [vmem:[%s3218_s1 + $0x2] sm:$0x3] (!%p152_p3)  ;;  %vm303_vm0 = vcmask (!%p152_p3), 1041408   ;;  %v2964_v1 = vld [vmem:[%s3218_s1 + $0x8] sm:$0x3] (!%p152_p3)  ;;  %p179_p4 = scmp.lt.s32.totalorder (!%p152_p3), %s2910_s12, 1 }
   0x7   : > { %155 = sbr.rel (%p152_p3) target bundleno = 376 (0x178), region = 32  ;;  %2789 = vmatprep.subr.msk.bf16.mxu1 (!%p152_p3), %vm303_vm0, %v2146_v0  ;;  %2793 = vmatprep.subr.msk.bf16.mxu0 (!%p152_p3), %vm303_vm0, %v2964_v1  ;;  %v305_v2 = vsel (!%p152_p3), %vm303_vm0, %v2146_v0, 0  ;;  %v2972_v3 = vsel (!%p152_p3), %vm303_vm0, %v2964_v1, 0  ;;  %v216_v4 = vld [vmem:[%s3218_s1] sm:$0x3] (!%p152_p3)  ;;  %vm278_vm1 = vcmask (!%p152_p3), 31744  }
   0x8   : > { %2498 = vmatpush3.bf16.msra.mxu1 (!%p152_p3), %v305_v2  ;;  %2570 = vmatpush3.bf16.msra.mxu0 (!%p152_p3), %v2972_v3  ;;  %v2294_v5 = vld [vmem:[%s3218_s1 + $0xa] sm:$0x3] (!%p152_p3)  ;;  %v469_v9 = vsel (!%p152_p3), %vm303_vm0, %v216_v4, 0  ;;  %v2327_v10 = vld [vmem:[%s3218_s1 + $0xc] sm:$0x3] (!%p152_p3) }
   0x9   : > { %2790 = vmatprep.subr.msk.bf16.mxu1 (!%p152_p3), %vm303_vm0, %v216_v4  ;;  %2795 = vmatprep.subr.msk.bf16.mxu0 (!%p152_p3), %vm303_vm0, %v2294_v5  ;;  %v1257_v12 = vsel (!%p152_p3), %vm303_vm0, %v2294_v5, 0  ;;  %v2195_v13 = vld [vmem:[%s3218_s1 + $0x4] sm:$0x3] (!%p152_p3)  ;;  %v1460_v24 = vsel (!%p152_p3), %vm303_vm0, %v2327_v10, 0  ;;  %v2361_v25 = vld [vmem:[%s3218_s1 + $0xe] sm:$0x3] (!%p152_p3) }
   0xa   : > { %v654_v33 = vsel (!%p152_p3), %vm303_vm0, %v2195_v13, 0  ;;  %v2228_v35 = vld [vmem:[%s3218_s1 + $0x6] sm:$0x3] (!%p152_p3)  ;;  %v1661_v44 = vsel (!%p152_p3), %vm303_vm0, %v2361_v25, 0  ;;  %v2395_v45 = vld [vmem:[%s3218_s1 + $0x10] sm:$0x3] (!%p152_p3) }
   0xb   : > { %v855_v53 = vsel (!%p152_p3), %vm303_vm0, %v2228_v35, 0  ;;  %v1862_v63 = vsel (!%p152_p3), %vm303_vm0, %v2395_v45, 0 }
   0xe   : > { %s3226_s12 = smov (!%p179_p4, %s2910_s12), 1 }
   0xf   : > { %s2799_s24 = smul.u32 432, %s3226_s12  ;;  %s2415_s11 = sshll.u32 %s3226_s12, 7 }
  0x10   : > { %s3174_s20 = scalar_lea.vmem %s3220_s3, %s2415_s11 }
  0x11   : > { %s2989_s27 = scalar_lea.vmem %s3217_s0, %s2799_s24 }
  0x12   : > { %v2824_v6 = vld [vmem:[%s2989_s27 + $0x48] sm:$0xff]   ;;  %v2825_v7 = vld [vmem:[%s2989_s27 + $0x120] sm:$0xff]   ;;  %v2826_v8 = vld [vmem:[%s2989_s27 + $0x50] sm:$0xff]  }
  0x13   : > { %2499 = vmatprep.mubr.msk.bf16.mxu1 %vm278_vm1, %v2824_v6  ;;  %2571 = vmatprep.mubr.msk.bf16.mxu0 %vm278_vm1, %v2825_v7  ;;  %v2827_v11 = vld [vmem:[%s2989_s27 + $0x128] sm:$0xff]   ;;  %v2828_v14 = vld [vmem:[%s2989_s27 + $0x58] sm:$0xff]   ;;  %v2829_v15 = vld [vmem:[%s2989_s27 + $0x130] sm:$0xff]  }
  0x14   : > { %2500 = vmatmul.mubr.msk.bf16.vlgmr.msra.gmra.mrb[0].mxu1 %vm278_vm1, %v2826_v8  ;;  %2572 = vmatmul.mubr.msk.bf16.vlgmr.msra.gmra.mrb[0].mxu0 %vm278_vm1, %v2827_v11  ;;  %v2830_v16 = vld [vmem:[%s2989_s27 + $0x60] sm:$0xff]   ;;  %v2831_v17 = vld [vmem:[%s2989_s27 + $0x138] sm:$0xff]   ;;  %v2832_v18 = vld [vmem:[%s2989_s27 + $0x68] sm:$0xff]  }
  0x15   : > { %2516 = vmatpush3.bf16.msra.mxu1 %v469_v9  ;;  %2588 = vmatpush3.bf16.msra.mxu0 %v1257_v12  ;;  %v2833_v19 = vld [vmem:[%s2989_s27 + $0x168] sm:$0xff]   ;;  %v2834_v20 = vld [vmem:[%s2989_s27 + $0x70] sm:$0xff]   ;;  %v2836_v22 = vld [vmem:[%s2989_s27 + $0x78] sm:$0xff]  }
  0x16   : > { %2503 = vmatprep.mubr.msk.bf16.mxu1 %vm278_vm1, %v2828_v14  ;;  %2575 = vmatprep.mubr.msk.bf16.mxu0 %vm278_vm1, %v2829_v15  ;;  %v2835_v21 = vld [vmem:[%s2989_s27 + $0x170] sm:$0xff]   ;;  %v2837_v23 = vld [vmem:[%s2989_s27 + $0x178] sm:$0xff]   ;;  %v2838_v26 = vld [vmem:[%s2989_s27 + $0x80] sm:$0xff]  }
  0x17   : > { %2796 = vmatprep.subr.msk.bf16.mxu0 %vm303_vm0, %v2327_v10  ;;  %2791 = vmatprep.subr.msk.bf16.mxu1 %vm303_vm0, %v2195_v13  ;;  %v2839_v27 = vld [vmem:[%s2989_s27 + $0x180] sm:$0xff]   ;;  %v2841_v29 = vld [vmem:[%s2989_s27 + $0x188] sm:$0xff]   ;;  %v2843_v31 = vld [vmem:[%s2989_s27 + $0x190] sm:$0xff]  }
  0x18   : > { %v2840_v28 = vld [vmem:[%s2989_s27] sm:$0xff]   ;;  %v2842_v30 = vld [vmem:[%s2989_s27 + $0x8] sm:$0xff]   ;;  %v2844_v32 = vld [vmem:[%s2989_s27 + $0x10] sm:$0xff]  }
  0x19   : > { %v2845_v34 = vld [vmem:[%s2989_s27 + $0x198] sm:$0xff]   ;;  %v2847_v37 = vld [vmem:[%s2989_s27 + $0x1a0] sm:$0xff]   ;;  %v2849_v39 = vld [vmem:[%s2989_s27 + $0x8] sm:$0xff]  }
  0x1a   : > { %v2846_v36 = vld [vmem:[%s2989_s27 + $0x18] sm:$0xff]   ;;  %v2848_v38 = vld [vmem:[%s2989_s27 + $0x20] sm:$0xff]   ;;  %v2850_v40 = vld [vmem:[%s2989_s27 + $0x28] sm:$0xff]  }
  0x1b   : > { %v2851_v41 = vld [vmem:[%s2989_s27 + $0x10] sm:$0xff]   ;;  %v2853_v43 = vld [vmem:[%s2989_s27 + $0x18] sm:$0xff]   ;;  %v2855_v47 = vld [vmem:[%s2989_s27 + $0x20] sm:$0xff]  }
  0x1c   : > { %2504 = vmatmul.mubr.msk.bf16.gmra.mrb[4].mxu1 %vm278_vm1, %v2830_v16  ;;  %2576 = vmatmul.mubr.msk.bf16.gmra.mrb[4].mxu0 %vm278_vm1, %v2831_v17  ;;  %v2852_v42 = vld [vmem:[%s2989_s27 + $0x30] sm:$0xff]   ;;  %v2854_v46 = vld [vmem:[%s2989_s27 + $0x38] sm:$0xff]   ;;  %v2857_v49 = vld [vmem:[%s2989_s27 + $0x28] sm:$0xff]  }
  0x1d   : > { %2507 = vmatprep.mubr.msk.bf16.mxu1 %vm278_vm1, %v2832_v18  ;;  %2589 = vmatprep.mubr.msk.bf16.mxu0 %vm278_vm1, %v2833_v19  ;;  %v2856_v48 = vld [vmem:[%s2989_s27 + $0x90] sm:$0xff]   ;;  %v2858_v50 = vld [vmem:[%s2989_s27 + $0x98] sm:$0xff]   ;;  %v2860_v52 = vld [vmem:[%s2989_s27 + $0xa0] sm:$0xff]  }
  0x1e   : > { %v2859_v51 = vld [vmem:[%s2989_s27 + $0x30] sm:$0xff]   ;;  %v2861_v54 = vld [vmem:[%s2989_s27 + $0x38] sm:$0xff]   ;;  %v2862_v55 = vld [vmem:[%s2989_s27 + $0xa8] sm:$0xff]  }
  0x1f   : > { %v2863_v56 = vld [vmem:[%s2989_s27 + $0x40] sm:$0xff]   ;;  %v2864_v57 = vld [vmem:[%s2989_s27 + $0xb0] sm:$0xff]   ;;  %v2866_v59 = vld [vmem:[%s2989_s27 + $0xb8] sm:$0xff]  }
  0x20   : > { %v2865_v58 = vld [vmem:[%s2989_s27 + $0x50] sm:$0xff]   ;;  %v2867_v60 = vld [vmem:[%s2989_s27 + $0x58] sm:$0xff]   ;;  %v2868_v61 = vld [vmem:[%s2989_s27 + $0xc0] sm:$0xff]  }
  0x21   : > { %v2869_v62 = vld [vmem:[%s2989_s27 + $0x60] sm:$0xff]   ;;  %v2870_v0 = vld [vmem:[%s2989_s27 + $0xc8] sm:$0xff]   ;;  %v2872_v2 = vld [vmem:[%s2989_s27 + $0xd8] sm:$0xff]  }
  0x22   : > { %v2873_v4 = vld [vmem:[%s2989_s27 + $0x70] sm:$0xff]   ;;  %v2874_v5 = vld [vmem:[%s2989_s27 + $0xe0] sm:$0xff]   ;;  %v2875_v6 = vld [vmem:[%s2989_s27 + $0x78] sm:$0xff]  }
  0x23   : > { %v2876_v7 = vld [vmem:[%s2989_s27 + $0xe8] sm:$0xff]   ;;  %v2877_v8 = vld [vmem:[%s2989_s27 + $0x80] sm:$0xff]   ;;  %v2878_v9 = vld [vmem:[%s2989_s27 + $0xf0] sm:$0xff]  }
  0x24   : > { %2508 = vmatmul.mubr.msk.bf16.gmra.mrb[8].mxu1 %vm278_vm1, %v2834_v20  ;;  %2590 = vmatmul.mubr.msk.bf16.vlgmr.msra.gmra.mrb[0].mxu0 %vm278_vm1, %v2835_v21  ;;  %v2879_v10 = vld [vmem:[%s2989_s27 + $0x88] sm:$0xff]   ;;  %v2880_v11 = vld [vmem:[%s2989_s27 + $0xf8] sm:$0xff]   ;;  %v2883_v13 = vld [vmem:[%s2989_s27 + $0xa0] sm:$0xff]  }
  0x25   : > { %2511 = vmatprep.mubr.msk.bf16.mxu1 %vm278_vm1, %v2836_v22  ;;  %2606 = vmatpush3.bf16.msra.mxu0 %v1460_v24  ;;  %v2881_v12 = vld [vmem:[%s2989_s27 + $0x98] sm:$0xff]   ;;  %v2884_v14 = vld [vmem:[%s2989_s27 + $0x108] sm:$0xff]   ;;  %v2886_v16 = vld [vmem:[%s2989_s27 + $0x110] sm:$0xff]  }
  0x26   : > { %2593 = vmatprep.mubr.msk.bf16.mxu0 %vm278_vm1, %v2837_v23  ;;  %2797 = vmatprep.subr.msk.bf16.mxu0 %vm303_vm0, %v2361_v25  ;;  %v2885_v15 = vld [vmem:[%s2989_s27 + $0xa8] sm:$0xff]   ;;  %v2887_v17 = vld [vmem:[%s2989_s27 + $0xb0] sm:$0xff]   ;;  %v2888_v18 = vld [vmem:[%s2989_s27 + $0x140] sm:$0xff]  }
  0x27   : > { %v2889_v19 = vld [vmem:[%s2989_s27 + $0xb8] sm:$0xff]   ;;  %v2890_v20 = vld [vmem:[%s2989_s27 + $0x148] sm:$0xff]   ;;  %v2891_v21 = vld [vmem:[%s2989_s27 + $0xc0] sm:$0xff]  }
  0x28   : > { %v2892_v22 = vld [vmem:[%s2989_s27 + $0x150] sm:$0xff]   ;;  %v2893_v23 = vld [vmem:[%s2989_s27 + $0xc8] sm:$0xff]   ;;  %v2894_v24 = vld [vmem:[%s2989_s27 + $0x158] sm:$0xff]  }
  0x29   : > { %v2895_v25 = vld [vmem:[%s2989_s27 + $0xd0] sm:$0xff]  }
  0x2c   : > { %2512 = vmatmul.mubr.msk.bf16.gmra.mrb[12].mxu1 %vm278_vm1, %v2838_v26  ;;  %2594 = vmatmul.mubr.msk.bf16.gmra.mrb[4].mxu0 %vm278_vm1, %v2839_v27 }
  0x2d   : > { %2517 = vmatprep.mubr.msk.bf16.mxu1 %vm278_vm1, %v2840_v28  ;;  %2597 = vmatprep.mubr.msk.bf16.mxu0 %vm278_vm1, %v2841_v29 }
  0x34   : > { %2518 = vmatmul.mubr.msk.bf16.vlgmr.msra.gmra.mrb[0].mxu1 %vm278_vm1, %v2842_v30  ;;  %2598 = vmatmul.mubr.msk.bf16.gmra.mrb[8].mxu0 %vm278_vm1, %v2843_v31 }
  0x35   : > { %2534 = vmatpush3.bf16.msra.mxu1 %v654_v33  ;;  %2521 = vmatprep.mubr.msk.bf16.mxu1 %vm278_vm1, %v2844_v32 }
  0x36   : > { %2601 = vmatprep.mubr.msk.bf16.mxu0 %vm278_vm1, %v2845_v34  ;;  %2792 = vmatprep.subr.msk.bf16.mxu1 %vm303_vm0, %v2228_v35  ;;  %v3169_v35 = vld [vmem:[%s3219_s2] ss:$0 sm:$0xff] }
  0x3c   : > { %2522 = vmatmul.mubr.msk.bf16.gmra.mrb[4].mxu1 %vm278_vm1, %v2846_v36  ;;  %2602 = vmatmul.mubr.msk.bf16.gmra.mrb[12].mxu0 %vm278_vm1, %v2847_v37 }
  0x3d   : > { %2525 = vmatprep.mubr.msk.bf16.mxu1 %vm278_vm1, %v2848_v38  ;;  %2607 = vmatprep.mubr.msk.bf16.mxu0 %vm278_vm1, %v2849_v39 }
  0x44   : > { %2526 = vmatmul.mubr.msk.bf16.gmra.mrb[8].mxu1 %vm278_vm1, %v2850_v40  ;;  %2608 = vmatmul.mubr.msk.bf16.vlgmr.msra.gmra.mrb[0].mxu0 %vm278_vm1, %v2851_v41 }
  0x45   : > { %2529 = vmatprep.mubr.msk.bf16.mxu1 %vm278_vm1, %v2852_v42  ;;  %2624 = vmatpush3.bf16.msra.mxu0 %v1661_v44 }
  0x46   : > { %2611 = vmatprep.mubr.msk.bf16.mxu0 %vm278_vm1, %v2853_v43  ;;  %2798 = vmatprep.subr.msk.bf16.mxu0 %vm303_vm0, %v2395_v45 }
  0x4c   : > { %2530 = vmatmul.mubr.msk.bf16.gmra.mrb[12].mxu1 %vm278_vm1, %v2854_v46  ;;  %2612 = vmatmul.mubr.msk.bf16.gmra.mrb[4].mxu0 %vm278_vm1, %v2855_v47 }
  0x4d   : > { %2535 = vmatprep.mubr.msk.bf16.mxu1 %vm278_vm1, %v2856_v48  ;;  %2615 = vmatprep.mubr.msk.bf16.mxu0 %vm278_vm1, %v2857_v49 }
  0x54   : > { %2536 = vmatmul.mubr.msk.bf16.vlgmr.msra.gmra.mrb[0].mxu1 %vm278_vm1, %v2858_v50  ;;  %2616 = vmatmul.mubr.msk.bf16.gmra.mrb[8].mxu0 %vm278_vm1, %v2859_v51 }
  0x55   : > { %2552 = vmatpush3.bf16.msra.mxu1 %v855_v53  ;;  %2539 = vmatprep.mubr.msk.bf16.mxu1 %vm278_vm1, %v2860_v52 }
  0x56   : > { %2619 = vmatprep.mubr.msk.bf16.mxu0 %vm278_vm1, %v2861_v54  ;;  %2794 = vmatprep.subr.msk.bf16.mxu1 %vm303_vm0, %v2964_v1  ;;  %v2871_v1 = vld [vmem:[%s2989_s27 + $0x68] sm:$0xff]  }
  0x5c   : > { %2540 = vmatmul.mubr.msk.bf16.gmra.mrb[4].mxu1 %vm278_vm1, %v2862_v55  ;;  %2620 = vmatmul.mubr.msk.bf16.gmra.mrb[12].mxu0 %vm278_vm1, %v2863_v56 }
  0x5d   : > { %2543 = vmatprep.mubr.msk.bf16.mxu1 %vm278_vm1, %v2864_v57  ;;  %2625 = vmatprep.mubr.msk.bf16.mxu0 %vm278_vm1, %v2865_v58 }
  0x64   : > { %2544 = vmatmul.mubr.msk.bf16.gmra.mrb[8].mxu1 %vm278_vm1, %v2866_v59  ;;  %2626 = vmatmul.mubr.msk.bf16.vlgmr.msra.gmra.mrb[0].mxu0 %vm278_vm1, %v2867_v60 }
  0x65   : > { %2547 = vmatprep.mubr.msk.bf16.mxu1 %vm278_vm1, %v2868_v61  ;;  %2642 = vmatpush3.bf16.msra.mxu0 %v1862_v63 }
  0x66   : > { %2629 = vmatprep.mubr.msk.bf16.mxu0 %vm278_vm1, %v2869_v62 }
  0x6c   : > { %2548 = vmatmul.mubr.msk.bf16.gmra.mrb[12].mxu1 %vm278_vm1, %v2870_v0  ;;  %2630 = vmatmul.mubr.msk.bf16.gmra.mrb[4].mxu0 %vm278_vm1, %v2871_v1 }
  0x6d   : > { %2553 = vmatprep.mubr.msk.bf16.mxu1 %vm278_vm1, %v2872_v2  ;;  %2633 = vmatprep.mubr.msk.bf16.mxu0 %vm278_vm1, %v2873_v4 }
  0x74   : > { %2554 = vmatmul.mubr.msk.bf16.vlgmr.msra.gmra.mrb[0].mxu1 %vm278_vm1, %v2874_v5  ;;  %2634 = vmatmul.mubr.msk.bf16.gmra.mrb[8].mxu0 %vm278_vm1, %v2875_v6 }
  0x75   : > { %2660 = vmatpush3.bf16.msra.mxu1 %v2972_v3  ;;  %2557 = vmatprep.mubr.msk.bf16.mxu1 %vm278_vm1, %v2876_v7  ;;  %v2882_v3 = vld [vmem:[%s2989_s27 + $0x100] sm:$0xff]  }
  0x76   : > { %2637 = vmatprep.mubr.msk.bf16.mxu0 %vm278_vm1, %v2877_v8 }
  0x7c   : > { %2558 = vmatmul.mubr.msk.bf16.gmra.mrb[4].mxu1 %vm278_vm1, %v2878_v9  ;;  %2638 = vmatmul.mubr.msk.bf16.gmra.mrb[12].mxu0 %vm278_vm1, %v2879_v10 }
  0x7d   : > { %2561 = vmatprep.mubr.msk.bf16.mxu1 %vm278_vm1, %v2880_v11  ;;  %2643 = vmatprep.mubr.msk.bf16.mxu0 %vm278_vm1, %v2881_v12 }
  0x84   : > { %2562 = vmatmul.mubr.msk.bf16.gmra.mrb[8].mxu1 %vm278_vm1, %v2882_v3  ;;  %2644 = vmatmul.mubr.msk.bf16.vlgmr.msra.gmra.mrb[0].mxu0 %vm278_vm1, %v2883_v13 }
  0x85   : > { %2565 = vmatprep.mubr.msk.bf16.mxu1 %vm278_vm1, %v2884_v14  ;;  %2647 = vmatprep.mubr.msk.bf16.mxu0 %vm278_vm1, %v2885_v15 }
  0x8c   : > { %2566 = vmatmul.mubr.msk.bf16.gmra.mrb[12].mxu1 %vm278_vm1, %v2886_v16  ;;  %2648 = vmatmul.mubr.msk.bf16.gmra.mrb[4].mxu0 %vm278_vm1, %v2887_v17 }
  0x8d   : > { %2579 = vmatprep.mubr.msk.bf16.mxu1 %vm278_vm1, %v2888_v18  ;;  %2651 = vmatprep.mubr.msk.bf16.mxu0 %vm278_vm1, %v2889_v19 }
  0x94   : > { %2580 = vmatmul.mubr.msk.bf16.vlgmr.msra.gmra.mrb[8].mxu1 %vm278_vm1, %v2890_v20  ;;  %2652 = vmatmul.mubr.msk.bf16.gmra.mrb[8].mxu0 %vm278_vm1, %v2891_v21 }
  0x95   : > { %2583 = vmatprep.mubr.msk.bf16.mxu1 %vm278_vm1, %v2892_v22  ;;  %2655 = vmatprep.mubr.msk.bf16.mxu0 %vm278_vm1, %v2893_v23 }
  0x9c   : > { %2584 = vmatmul.mubr.msk.bf16.gmra.mrb[12].mxu1 %vm278_vm1, %v2894_v24  ;;  %2656 = vmatmul.mubr.msk.bf16.gmra.mrb[12].mxu0 %vm278_vm1, %v2895_v25 }
 0x147   : > { %v2555_v26 = vpop.f32.mrb[0].mxu1 }
 0x148   : > { %v891_v27 = vpop.f32.mrb[1].mxu1 }
 0x149   : > { %v2556_v28 = vpop.f32.mrb[2].mxu1 }
 0x14a   : > { %v894_v29 = vpop.f32.mrb[3].mxu1 }
 0x14f   : > { %v2559_v30 = vpop.f32.mrb[4].mxu1 }
 0x150   : > { %v907_v31 = vpop.f32.mrb[5].mxu1 }
 0x151   : > { %v2560_v32 = vpop.f32.mrb[6].mxu1 }
 0x152   : > { %v910_v33 = vpop.f32.mrb[7].mxu1 }
 0x157   : > { %v2645_v34 = vpop.f32.mrb[0].mxu0 }
 0x158   : > { %v2661_v36 = vadd.f32 %v2645_v34, %v2555_v26  ;;  %v1898_v37 = vpop.f32.mrb[1].mxu0 }
 0x159   : > { %v2662_v38 = vadd.f32 %v1898_v37, %v891_v27  ;;  %v2646_v39 = vpop.f32.mrb[2].mxu0 }
 0x15a   : > { %v1986_v40 = vadd.f32 %v2661_v36, %v3169_v35  ;;  %v2663_v41 = vadd.f32 %v2646_v39, %v2556_v28  ;;  %v1901_v42 = vpop.f32.mrb[3].mxu0 }
 0x15b   : > { %v1984_v43 = vadd.f32 %v2662_v38, %v3169_v35  ;;  %v2664_v44 = vadd.f32 %v1901_v42, %v894_v29 }
 0x15c   : > { %2002 = vst [vmem:[%s3174_s20 + $0x10] sm:$0xff] %v1986_v40  ;;  %v1987_v45 = vadd.f32 %v2663_v41, %v3169_v35 }
 0x15d   : > { %2000 = vst [vmem:[%s3174_s20] sm:$0xff] %v1984_v43  ;;  %v1985_v46 = vadd.f32 %v2664_v44, %v3169_v35 }
 0x15e   : > { %2003 = vst [vmem:[%s3174_s20 + $0x18] sm:$0xff] %v1987_v45 }
 0x15f   : > { %2001 = vst [vmem:[%s3174_s20 + $0x8] sm:$0xff] %v1985_v46  ;;  %v2649_v47 = vpop.f32.mrb[4].mxu0 }
 0x160   : > { %v2665_v48 = vadd.f32 %v2649_v47, %v2559_v30  ;;  %v1914_v49 = vpop.f32.mrb[5].mxu0 }
 0x161   : > { %v2666_v50 = vadd.f32 %v1914_v49, %v907_v31  ;;  %v2650_v51 = vpop.f32.mrb[6].mxu0 }
 0x162   : > { %v1990_v52 = vadd.f32 %v2665_v48, %v3169_v35  ;;  %v2667_v53 = vadd.f32 %v2650_v51, %v2560_v32  ;;  %v1917_v54 = vpop.f32.mrb[7].mxu0 }
 0x163   : > { %v1988_v55 = vadd.f32 %v2666_v50, %v3169_v35  ;;  %v2668_v56 = vadd.f32 %v1917_v54, %v910_v33 }
 0x164   : > { %2006 = vst [vmem:[%s3174_s20 + $0x30] sm:$0xff] %v1990_v52  ;;  %v1991_v57 = vadd.f32 %v2667_v53, %v3169_v35 }
 0x165   : > { %2004 = vst [vmem:[%s3174_s20 + $0x20] sm:$0xff] %v1988_v55  ;;  %v1989_v58 = vadd.f32 %v2668_v56, %v3169_v35 }
 0x166   : > { %2007 = vst [vmem:[%s3174_s20 + $0x38] sm:$0xff] %v1991_v57 }
 0x167   : > { %v2581_v59 = vpop.f32.mrb[8].mxu1  ;;  %2005 = vst [vmem:[%s3174_s20 + $0x28] sm:$0xff] %v1989_v58  ;;  %v2653_v60 = vpop.f32.mrb[8].mxu0 }
 0x168   : > { %v1124_v61 = vpop.f32.mrb[9].mxu1  ;;  %v2669_v62 = vadd.f32 %v2653_v60, %v2581_v59  ;;  %v1930_v63 = vpop.f32.mrb[9].mxu0 }
 0x169   : > { %v2582_v0 = vpop.f32.mrb[10].mxu1  ;;  %v2670_v1 = vadd.f32 %v1930_v63, %v1124_v61  ;;  %v2654_v2 = vpop.f32.mrb[10].mxu0 }
 0x16a   : > { %v1127_v4 = vpop.f32.mrb[11].mxu1  ;;  %v1994_v5 = vadd.f32 %v2669_v62, %v3169_v35  ;;  %v2671_v6 = vadd.f32 %v2654_v2, %v2582_v0  ;;  %v1933_v7 = vpop.f32.mrb[11].mxu0 }
 0x16b   : > { %v1992_v8 = vadd.f32 %v2670_v1, %v3169_v35  ;;  %v2672_v9 = vadd.f32 %v1933_v7, %v1127_v4 }
 0x16c   : > { %2010 = vst [vmem:[%s3174_s20 + $0x50] sm:$0xff] %v1994_v5  ;;  %v1995_v10 = vadd.f32 %v2671_v6, %v3169_v35 }
 0x16d   : > { %2008 = vst [vmem:[%s3174_s20 + $0x40] sm:$0xff] %v1992_v8  ;;  %v1993_v11 = vadd.f32 %v2672_v9, %v3169_v35 }
 0x16e   : > { %2011 = vst [vmem:[%s3174_s20 + $0x58] sm:$0xff] %v1995_v10 }
 0x16f   : > { %v2585_v12 = vpop.f32.mrb[12].mxu1  ;;  %2009 = vst [vmem:[%s3174_s20 + $0x48] sm:$0xff] %v1993_v11  ;;  %v2657_v3 = vpop.f32.mrb[12].mxu0 }
 0x170   : > { %v1140_v13 = vpop.f32.mrb[13].mxu1  ;;  %v2673_v14 = vadd.f32 %v2657_v3, %v2585_v12  ;;  %v1946_v15 = vpop.f32.mrb[13].mxu0 }
 0x171   : > { %v2586_v16 = vpop.f32.mrb[14].mxu1  ;;  %v2674_v17 = vadd.f32 %v1946_v15, %v1140_v13  ;;  %v2658_v18 = vpop.f32.mrb[14].mxu0 }
 0x172   : > { %v1143_v19 = vpop.f32.mrb[15].mxu1  ;;  %v1998_v20 = vadd.f32 %v2673_v14, %v3169_v35  ;;  %v2675_v21 = vadd.f32 %v2658_v18, %v2586_v16  ;;  %v1949_v22 = vpop.f32.mrb[15].mxu0 }
 0x173   : > { %v1996_v23 = vadd.f32 %v2674_v17, %v3169_v35  ;;  %v2676_v24 = vadd.f32 %v1949_v22, %v1143_v19 }
 0x174   : > { %2014 = vst [vmem:[%s3174_s20 + $0x70] sm:$0xff] %v1998_v20  ;;  %v1999_v25 = vadd.f32 %v2675_v21, %v3169_v35 }
 0x175   : > { %2012 = vst [vmem:[%s3174_s20 + $0x60] sm:$0xff] %v1996_v23  ;;  %v1997_v26 = vadd.f32 %v2676_v24, %v3169_v35 }
 0x176   : > { %2015 = vst [vmem:[%s3174_s20 + $0x78] sm:$0xff] %v1999_v25 }
 0x177   : > { %2013 = vst [vmem:[%s3174_s20 + $0x68] sm:$0xff] %v1997_v26 }
 0x178 PF: > { %s13_s14 = sadd.s32 1, %s2918_s14   ;;  %s3221_s12 = smov %s2914_s13 }
 0x179   : > { %p10_p5 = scmp.ge.s32.totalorder %s13_s14, 4   ;;  %s3222_s13 = smov %s3224_s15 }
 0x17b   :  { %12 = sbr.rel (!%p10_p5) target bundleno = 2 (0x2), region = 79 }

</bundles_post_ra>
